<compile_context>
chip_gen: v6e
topology: v6e:2x2x1
jax: 0.10.0
libtpu: 0.0.40
codegen_flags: <defaults>
</compile_context>

<pallas_src>
import jax
import jax.numpy as jnp
from jax.experimental import pallas as pl
from jax.experimental.pallas import tpu as pltpu

STATE_DIM = 4      # CartPole-v1 observation_space.shape[0]
ACTION_DIM = 2     # CartPole-v1 action_space.n
HIDDEN = 128
LANE = 128         # lane-padded output width

# Packed parameter slab layout (rows; all starts are sublane-aligned where it
# matters for sliced views):
#   rows [0, 4)    : W1  (STATE_DIM, HIDDEN)
#   row   8        : b1  (HIDDEN,)
#   rows [16, 144) : W2  (HIDDEN, ACTION_DIM) zero-padded to (HIDDEN, LANE)
#   row   144      : b2  (ACTION_DIM,) zero-padded to (LANE,)
W1_ROW = 0
B1_ROW = 8
W2_ROW = 16
B2_ROW = W2_ROW + HIDDEN          # 144
SLAB_ROWS = 152                   # padded to a multiple of 8


def dqn_kernel(x_ref, p_ref, o_ref):
    x = x_ref[...]                                     # (B, STATE_DIM) f32

    # ---- Layer 1: Linear(4 -> 128) + ReLU, on the VPU -------------------
    # K=4 contraction unrolled as 4 broadcast-FMAs; MXU would be pure
    # pipeline-fill latency for a depth-4 contraction.
    h = p_ref[B1_ROW:B1_ROW + 1, :]                    # (1, HIDDEN) bias
    for k in range(STATE_DIM):                         # static unroll
        w1_row = p_ref[W1_ROW + k:W1_ROW + k + 1, :]   # (1, HIDDEN)
        h = h + x[:, k:k + 1] * w1_row                 # (B,1)*(1,H) -> (B,H)
    h = jnp.maximum(h, 0.0)

    # ---- Layer 2: Linear(128 -> 2), lane-padded to 128, on the MXU ------
    w2 = p_ref[W2_ROW:W2_ROW + HIDDEN, :]              # (HIDDEN, LANE)
    b2 = p_ref[B2_ROW:B2_ROW + 1, :]                   # (1, LANE)
    out = jnp.dot(h, w2, preferred_element_type=jnp.float32) + b2
    o_ref[...] = out.astype(o_ref.dtype)               # lane-dense store


def pack_params(w1, b1, w2, b2):
    """Pack (w1, b1, w2, b2) into one zero-padded (SLAB_ROWS, LANE) f32 slab."""
    slab = jnp.zeros((SLAB_ROWS, LANE), jnp.float32)
    slab = slab.at[W1_ROW:W1_ROW + STATE_DIM, :HIDDEN].set(w1)
    slab = slab.at[B1_ROW, :HIDDEN].set(b1.reshape(HIDDEN))
    slab = slab.at[W2_ROW:W2_ROW + HIDDEN, :ACTION_DIM].set(w2)
    slab = slab.at[B2_ROW, :ACTION_DIM].set(b2.reshape(ACTION_DIM))
    return slab


def dqn_forward(x, packed_params):
    B = x.shape[0]
    vmem_spec = pl.BlockSpec(memory_space=pltpu.MemorySpace.VMEM)
    out_padded = pl.pallas_call(
        dqn_kernel,
        out_shape=jax.ShapeDtypeStruct((B, LANE), jnp.float32),
        in_specs=[vmem_spec, vmem_spec],    # 2 input DMAs total (x + params)
        out_specs=vmem_spec,
    )(x, packed_params)
    # Padded W2/b2 columns are zero, so this slice is exact.
    return out_padded[:, :ACTION_DIM]


def init_params(key):
    # Deterministic init mimicking PyTorch's default Linear init:
    # U(-1/sqrt(fan_in), 1/sqrt(fan_in)).
    k1, k2, k3, k4 = jax.random.split(key, 4)
    bound1 = 1.0 / jnp.sqrt(STATE_DIM)
    bound2 = 1.0 / jnp.sqrt(HIDDEN)
    w1 = jax.random.uniform(k1, (STATE_DIM, HIDDEN), jnp.float32, -bound1, bound1)
    b1 = jax.random.uniform(k2, (HIDDEN,), jnp.float32, -bound1, bound1)
    w2 = jax.random.uniform(k3, (HIDDEN, ACTION_DIM), jnp.float32, -bound2, bound2)
    b2 = jax.random.uniform(k4, (ACTION_DIM,), jnp.float32, -bound2, bound2)
    return w1, b1, w2, b2


def reference_forward(x, w1, b1, w2, b2):
    h = jnp.maximum(x @ w1 + b1[None, :], 0.0)
    return h @ w2 + b2[None, :]


if __name__ == "__main__":
    key = jax.random.PRNGKey(0)
    pkey, xkey = jax.random.split(key)
    w1, b1, w2, b2 = init_params(pkey)
    packed = pack_params(w1, b1, w2, b2)   # done once, reused across steps

    batch = 8                              # multiple of 8 (f32 sublanes)
    x = jax.random.normal(xkey, (batch, STATE_DIM), jnp.float32)

    out = dqn_forward(x, packed)
    out = jax.block_until_ready(out)

    ref = reference_forward(x, w1, b1, w2, b2)
    assert out.shape == (batch, ACTION_DIM)
    assert jnp.allclose(out, ref, atol=1e-5, rtol=1e-5)

    # TODO(synk): in a full DQN step, also fuse the target-network forward /
    # greedy argmax into this same pallas_call to amortize launch + DMA cost.

    print("KERNEL_OK")
</pallas_src>

<mosaic_0001>
module attributes {stable_mosaic.version = 11 : i64} {
  func.func @dqn_kernel(%arg0: memref<8x4xf32, #tpu.memory_space<vmem>>, %arg1: memref<152x128xf32, #tpu.memory_space<vmem>>, %arg2: memref<8x128xf32, #tpu.memory_space<vmem>>) attributes {dimension_semantics = [], scalar_prefetch = 0 : i64, scratch_operands = 0 : i64, tpu.core_type = #tpu.core_type<tc>} {
    %c0 = arith.constant 0 : index
    %c0_0 = arith.constant 0 : index
    %0 = vector.load %arg0[%c0, %c0_0] : memref<8x4xf32, #tpu.memory_space<vmem>>, vector<8x4xf32>
    %c8 = arith.constant 8 : index
    %c0_1 = arith.constant 0 : index
    %1 = vector.load %arg1[%c8, %c0_1] : memref<152x128xf32, #tpu.memory_space<vmem>>, vector<1x128xf32>
    %c0_2 = arith.constant 0 : index
    %c0_3 = arith.constant 0 : index
    %2 = vector.load %arg1[%c0_2, %c0_3] : memref<152x128xf32, #tpu.memory_space<vmem>>, vector<1x128xf32>
    %3 = vector.extract_strided_slice %0 {offsets = [0, 0], sizes = [8, 1], strides = [1, 1]} : vector<8x4xf32> to vector<8x1xf32>
    %4 = vector.broadcast %3 : vector<8x1xf32> to vector<8x128xf32>
    %5 = vector.broadcast %2 : vector<1x128xf32> to vector<8x128xf32>
    %6 = arith.mulf %4, %5 : vector<8x128xf32>
    %7 = vector.broadcast %1 : vector<1x128xf32> to vector<8x128xf32>
    %8 = arith.addf %7, %6 : vector<8x128xf32>
    %c1 = arith.constant 1 : index
    %c0_4 = arith.constant 0 : index
    %9 = vector.load %arg1[%c1, %c0_4] : memref<152x128xf32, #tpu.memory_space<vmem>>, vector<1x128xf32>
    %10 = vector.extract_strided_slice %0 {offsets = [0, 1], sizes = [8, 1], strides = [1, 1]} : vector<8x4xf32> to vector<8x1xf32>
    %11 = vector.broadcast %10 : vector<8x1xf32> to vector<8x128xf32>
    %12 = vector.broadcast %9 : vector<1x128xf32> to vector<8x128xf32>
    %13 = arith.mulf %11, %12 : vector<8x128xf32>
    %14 = arith.addf %8, %13 : vector<8x128xf32>
    %c2 = arith.constant 2 : index
    %c0_5 = arith.constant 0 : index
    %15 = vector.load %arg1[%c2, %c0_5] : memref<152x128xf32, #tpu.memory_space<vmem>>, vector<1x128xf32>
    %16 = vector.extract_strided_slice %0 {offsets = [0, 2], sizes = [8, 1], strides = [1, 1]} : vector<8x4xf32> to vector<8x1xf32>
    %17 = vector.broadcast %16 : vector<8x1xf32> to vector<8x128xf32>
    %18 = vector.broadcast %15 : vector<1x128xf32> to vector<8x128xf32>
    %19 = arith.mulf %17, %18 : vector<8x128xf32>
    %20 = arith.addf %14, %19 : vector<8x128xf32>
    %c3 = arith.constant 3 : index
    %c0_6 = arith.constant 0 : index
    %21 = vector.load %arg1[%c3, %c0_6] : memref<152x128xf32, #tpu.memory_space<vmem>>, vector<1x128xf32>
    %22 = vector.extract_strided_slice %0 {offsets = [0, 3], sizes = [8, 1], strides = [1, 1]} : vector<8x4xf32> to vector<8x1xf32>
    %23 = vector.broadcast %22 : vector<8x1xf32> to vector<8x128xf32>
    %24 = vector.broadcast %21 : vector<1x128xf32> to vector<8x128xf32>
    %25 = arith.mulf %23, %24 : vector<8x128xf32>
    %26 = arith.addf %20, %25 : vector<8x128xf32>
    %cst = arith.constant 0.000000e+00 : f32
    %27 = vector.broadcast %cst : f32 to vector<8x128xf32>
    %28 = arith.maximumf %26, %27 : vector<8x128xf32>
    %c16 = arith.constant 16 : index
    %c0_7 = arith.constant 0 : index
    %29 = vector.load %arg1[%c16, %c0_7] : memref<152x128xf32, #tpu.memory_space<vmem>>, vector<128x128xf32>
    %c144 = arith.constant 144 : index
    %c0_8 = arith.constant 0 : index
    %30 = vector.load %arg1[%c144, %c0_8] : memref<152x128xf32, #tpu.memory_space<vmem>>, vector<1x128xf32>
    %cst_9 = arith.constant dense<0.000000e+00> : vector<8x128xf32>
    %31 = tpu.matmul %28, %29, %cst_9 {dimension_numbers = #tpu.dot_dimension_numbers<[1], [0], [0], [1], [0, 0, 1, 1], [], []>} : vector<8x128xf32>, vector<128x128xf32>, vector<8x128xf32> -> vector<8x128xf32>
    %32 = vector.broadcast %30 : vector<1x128xf32> to vector<8x128xf32>
    %33 = arith.addf %31, %32 : vector<8x128xf32>
    %c0_10 = arith.constant 0 : index
    %c0_11 = arith.constant 0 : index
    %34 = vector.load %arg2[%c0_10, %c0_11] : memref<8x128xf32, #tpu.memory_space<vmem>>, vector<8x128xf32>
    tpu.vector_store %arg2[%c0_10, %c0_11], %33 {strides = array<i32>} : memref<8x128xf32, #tpu.memory_space<vmem>>, vector<8x128xf32>,
    return
  }
}

</mosaic_0001>

<bundles_post_ra>
// kernel: tpu_custom_call.1
= control target key start
LH: loop header
LB: loop body
LE: loop exit
PB: predicated region body
PF: predicated region fallthrough
CT: control target
= control target key end

     0   :  { %7 = vsyncpa [#allocation3], 0  ;;  %s336_s0 = inlined_call_operand.vmem [shape: f32[8,4], index: 0, kind: input, shape index: {}]   ;;  %s337_s1 = inlined_call_operand.hbm [shape: f32[152,128], index: 1, kind: input, shape index: {}]   ;;  %s338_s2 = inlined_call_operand.hbm [shape: f32[8,128], index: 2, kind: output, shape index: {}]  }
   0x1   :  { %8 = vsyncpa [#allocation4], 0  ;;  %s302_s9 = smov [#allocation2]  }
   0x2   :  { %s16_s10 = sshll.u32 %s302_s9, 4  ;;  %s17_s10 = int_to_ptr.vmem [resolvable:$true] %s16_s10 }
   0x3   :  { %s266_s11 = scalar_lea.vmem %s17_s10, 2432  ;;  %p271_p1 = scmp.lt.s32.totalorder %s17_s10, %s17_s10 }
   0x4   :  { %p267_p0 = scmp.ne.s32.totalorder %s17_s10, %s266_s11  ;;  %p272_p2 = scmp.lt.s32.totalorder %s266_s11, %s266_s11 }
   0x6   :  { %p273_p3 = por %p272_p2, %p271_p1 }
   0x8   :  { %p274_p4 = pnand %p273_p3, %p267_p0 }
   0xa   :  { %277 = shalt.err (!%p274_p4)
}
   0xb   :  { %s303_s12 = smov 128   ;;  %s304_s13 = smov 8  }
   0xc   :  { %22 = dma.hbm_to_vmem [thread:$0]  %s337_s1, 2432, %s17_s10, [#allocation3], %s303_s12, %s303_s12, %s304_s13  }
   0xd   :  { %298 = dma.done.wait [#allocation3], 2432  }
   0xe   :  { %299 = vsyncadd [#allocation3], 4294964864  ;;  %v305_v0 = vmov 0   ;;  %v306_v1 = vmov 2   ;;  %v307_v2 = vmov 0.0   ;;  %v26_v3 = vld [vmem:[%s336_s0] sm:$0xff] }
   0xf   :  { %253 = vset.pattern.permute.xlu0 %v305_v0  ;;  %255 = vset.pattern.permute.xlu1 %v306_v1  ;;  %v93_v4 = vld [vmem:[#allocation2 + $0x88] sm:$0xff]  ;;  %v92_v5 = vld [vmem:[#allocation2 + $0x80] sm:$0xff]  ;;  %v308_v6 = vmov 1   ;;  %v309_v7 = vmov 3   ;;  %v91_v8 = vld [vmem:[#allocation2 + $0x78] sm:$0xff]  ;;  %vm310_vm0 = vmmov 0  }
  0x10   :  { %208 = vmatprep.subr.mxu0 %v307_v2  ;;  %31 = vperm.xlu0 %253, %v26_v3   ;;  %v90_v9 = vld [vmem:[#allocation2 + $0x70] sm:$0xff]  ;;  %v89_v10 = vld [vmem:[#allocation2 + $0x68] sm:$0xff]  ;;  %v88_v11 = vld [vmem:[#allocation2 + $0x60] sm:$0xff]  ;;  %s311_s0 = smov [#allocation5]  }
  0x11   :  { %57 = vperm.xlu1 %255, %v26_v3   ;;  %209 = vmatpush3.msra.mxu0 %v93_v4  ;;  %v87_v12 = vld [vmem:[#allocation2 + $0x58] sm:$0xff]  ;;  %v86_v13 = vld [vmem:[#allocation2 + $0x50] sm:$0xff]  ;;  %v85_v14 = vld [vmem:[#allocation2 + $0x48] sm:$0xff]  ;;  %s176_s1 = sshll.u32 %s311_s0, 4  ;;  %s177_s1 = int_to_ptr.vmem [resolvable:$true] %s176_s1 }
  0x12   :  { %210 = vmatprep.subr.mxu0 %v307_v2  ;;  %240 = vmatprep.mubr.msk.f32.mxu0 %vm310_vm0, %v307_v2  ;;  %v84_v15 = vld [vmem:[#allocation2 + $0x40] sm:$0xff]  ;;  %v83_v16 = vld [vmem:[#allocation2 + $0x38] sm:$0xff]  ;;  %v82_v17 = vld [vmem:[#allocation2 + $0x30] sm:$0xff]  ;;  %s278_s18 = scalar_lea.vmem %s177_s1, 128  ;;  %p283_p6 = scmp.lt.s32.totalorder %s177_s1, %s177_s1 }
  0x13   :  { %211 = vmatpush3.msra.mxu0 %v92_v5  ;;  %v81_v18 = vld [vmem:[#allocation2 + $0x28] sm:$0xff]  ;;  %v80_v19 = vld [vmem:[#allocation2 + $0x20] sm:$0xff]  ;;  %v79_v20 = vld [vmem:[#allocation2 + $0x18] sm:$0xff]  ;;  %p279_p5 = scmp.ne.s32.totalorder %s177_s1, %s278_s18  ;;  %p284_p7 = scmp.lt.s32.totalorder %s278_s18, %s278_s18 }
  0x14   :  { %254 = vset.pattern.permute.xlu0 %v308_v6  ;;  %212 = vmatprep.subr.mxu0 %v307_v2  ;;  %v78_v21 = vld [vmem:[#allocation2 + $0x10] sm:$0xff]  ;;  %v185_v22 = vld [vmem:[#allocation2] ss:$0 sm:$0xff]  ;;  %v186_v26 = vld [vmem:[#allocation2 + $0x8] ss:$0 sm:$0xff] }
  0x15   :  { %256 = vset.pattern.permute.xlu1 %v309_v7  ;;  %46 = vperm.xlu0 %254, %v26_v3   ;;  %v187_v27 = vld [vmem:[#allocation2 + $0x1] ss:$0 sm:$0xff]  ;;  %v188_v28 = vld [vmem:[#allocation2 + $0x2] ss:$0 sm:$0xff]  ;;  %v189_v30 = vld [vmem:[#allocation2 + $0x3] ss:$0 sm:$0xff]  ;;  %p285_p8 = por %p284_p7, %p283_p6 }
  0x16   :  { %68 = vperm.xlu1 %256, %v26_v3   ;;  %213 = vmatpush3.msra.mxu0 %v91_v8  ;;  %v190_v40 = vld [vmem:[#allocation2 + $0x90] ss:$0 sm:$0xff] }
  0x17   :  { %214 = vmatprep.subr.mxu0 %v307_v2  ;;  %p286_p9 = pnand %p285_p8, %p279_p5 }
  0x18   :  { %215 = vmatpush3.msra.mxu0 %v90_v9 }
  0x19   :  { %257 = vset.pattern.permute.xlu0 %v309_v7  ;;  %216 = vmatprep.subr.mxu0 %v307_v2 }
  0x1a   :  { %217 = vmatpush3.msra.mxu0 %v89_v10 }
  0x1b   :  { %218 = vmatprep.subr.mxu0 %v307_v2 }
  0x1c   :  { %219 = vmatpush3.msra.mxu0 %v88_v11 }
  0x1d   :  { %220 = vmatprep.subr.mxu0 %v307_v2 }
  0x1e   :  { %221 = vmatpush3.msra.mxu0 %v87_v12 }
  0x1f   :  { %222 = vmatprep.subr.mxu0 %v307_v2 }
  0x20   :  { %223 = vmatpush3.msra.mxu0 %v86_v13 }
  0x21   :  { %224 = vmatprep.subr.mxu0 %v307_v2 }
  0x22   :  { %225 = vmatpush3.msra.mxu0 %v85_v14 }
  0x23   :  { %226 = vmatprep.subr.mxu0 %v307_v2 }
  0x24   :  { %227 = vmatpush3.msra.mxu0 %v84_v15 }
  0x25   :  { %228 = vmatprep.subr.mxu0 %v307_v2 }
  0x26   :  { %229 = vmatpush3.msra.mxu0 %v83_v16 }
  0x27   :  { %230 = vmatprep.subr.mxu0 %v307_v2 }
  0x28   :  { %231 = vmatpush3.msra.mxu0 %v82_v17 }
  0x29   :  { %232 = vmatprep.subr.mxu0 %v307_v2 }
  0x2a   :  { %233 = vmatpush3.msra.mxu0 %v81_v18 }
  0x2b   :  { %234 = vmatprep.subr.mxu0 %v307_v2 }
  0x2c   :  { %235 = vmatpush3.msra.mxu0 %v80_v19 }
  0x2d   :  { %236 = vmatprep.subr.mxu0 %v307_v2 }
  0x2e   :  { %237 = vmatpush3.msra.mxu0 %v79_v20 }
  0x2f   :  { %238 = vmatprep.subr.mxu0 %v307_v2 }
  0x30   :  { %239 = vmatpush3.msra.mxu0 %v78_v21 }
  0x8b   :  { %v32_v23 = vpop.permute.xlu0 %31 }
  0x8c   :  { %v58_v24 = vpop.permute.xlu1 %57  ;;  %v38_v25 = vmul.f32 %v185_v22, %v32_v23 }
  0x8d   :  { %v64_v34 = vmul.f32 %v188_v28, %v58_v24 }
  0x8e   :  { %v43_v32 = vadd.f32 %v186_v26, %v38_v25 }
  0x90   :  { %v47_v29 = vpop.permute.xlu0 %46 }
  0x91   :  { %v69_v31 = vpop.permute.xlu1 %68  ;;  %v53_v33 = vmul.f32 %v187_v27, %v47_v29 }
  0x92   :  { %v75_v36 = vmul.f32 %v189_v30, %v69_v31 }
  0x93   :  { %v54_v35 = vadd.f32 %v53_v33, %v43_v32 }
  0x95   :  { %v65_v37 = vadd.f32 %v64_v34, %v54_v35 }
  0x97   :  { %v76_v38 = vadd.f32 %v75_v36, %v65_v37 }
  0x99   :  { %v77_v39 = vmax.f32 %v76_v38, 0.0 }
  0x9b   :  { %241 = vmatmul.mubr.f32.vlgmr.msra.gmra.mxu0 %v77_v39 }
 0x15b   :  { %v165_v41 = vpop.f32.mrf.mxu0 }
 0x15c   :  { %v166_v42 = vadd.f32 %v190_v40, %v165_v41 }
 0x15d   :  { %v242_v43 = vpop.f32.mrf.mxu0 }
 0x15e   :  { %169 = vst [vmem:[#allocation5] sm:$0xff] %v166_v42 }
 0x15f   :  { %289 = shalt.err (!%p286_p9)
}
 0x160   :  { %179 = dma.vmem_to_hbm [thread:$0]  %s177_s1, 128, %s338_s2, [#allocation4]  }
 0x161   :  { %300 = dma.done.wait [#allocation4], 128  }
 0x162   :  { %301 = vsyncadd [#allocation4], 4294967168 }
 0x163   :  { %183 = vsyncpa [#allocation3], 1 }
 0x164   :  { %184 = vsyncpa [#allocation4], 1 }

</bundles_post_ra>
